<compile_context>
chip_gen: v6e
topology: v6e:2x2x1
jax: 0.10.0
libtpu: 0.0.40
codegen_flags: <defaults>
</compile_context>

<pallas_src>
import functools

import jax
import jax.numpy as jnp
from jax.experimental import pallas as pl
from jax.experimental.pallas import tpu as pltpu


def _round_up(x, m):
    return (x + m - 1) // m * m


# ------------------- tiled linear (bias / gelu / residual fused) ------------


def _linear_kernel(x_ref, w_ref, *rest, activation, has_bias, has_residual):
    idx = 0
    b_ref = None
    res_ref = None
    if has_bias:
        b_ref = rest[idx]
        idx += 1
    if has_residual:
        res_ref = rest[idx]
        idx += 1
    o_ref, acc_ref = rest[idx], rest[idx + 1]

    k = pl.program_id(2)

    @pl.when(k == 0)
    def _():
        acc_ref[...] = jnp.zeros_like(acc_ref)

    # x: [tm, tk] bf16, w: [tn, tk] bf16 (PyTorch [out, in] layout); f32 accum.
    acc_ref[...] += jax.lax.dot_general(
        x_ref[...], w_ref[...], (((1,), (1,)), ((), ())),
        preferred_element_type=jnp.float32)

    @pl.when(k == pl.num_programs(2) - 1)
    def _():
        y = acc_ref[...]
        if has_bias:
            y = y + b_ref[...].astype(jnp.float32)
        if activation == "gelu_tanh":
            # torch.nn.functional.gelu(x, approximate='tanh')
            c = jnp.float32(0.7978845608028654)  # sqrt(2/pi)
            y = 0.5 * y * (1.0 + jnp.tanh(c * (y + jnp.float32(0.044715) * y * y * y)))
        if has_residual:
            y = y + res_ref[...].astype(jnp.float32)
        o_ref[...] = y.astype(o_ref.dtype)


def linear(x, w, b=None, *, activation=None, residual=None, out_dtype=None,
           tm=256, tn=256, tk=512):
    """y = x @ w.T (+ b) (+ gelu) (+ residual).  w is PyTorch [out, in] layout.

    Tile defaults (256/256/512) target the 256-wide MXU on v6e/v7x and stay
    ~1.5 MB/stage double-buffered (safe for v7x's 64 MiB VMEM); on v5e 128-wide
    tiles would also suffice.  Small dims are handled by clamping + zero-pad;
    the output tile is kept a >=128 multiple for lane-dense (unmasked) stores.
    """
    T, K = x.shape
    N = w.shape[0]
    out_dtype = out_dtype or x.dtype

    tm = min(tm, _round_up(T, 8))
    tn = min(tn, _round_up(N, 128))     # lane-dense (>=128-multiple) output
    tk = min(tk, _round_up(K, 128))
    Tp, Np, Kp = _round_up(T, tm), _round_up(N, tn), _round_up(K, tk)

    xp = x if (Tp, Kp) == (T, K) else jnp.pad(x, ((0, Tp - T), (0, Kp - K)))
    wp = w if (Np, Kp) == (N, K) else jnp.pad(w, ((0, Np - N), (0, Kp - K)))

    inputs = [xp, wp]
    in_specs = [
        pl.BlockSpec((tm, tk), lambda i, j, k: (i, k)),
        pl.BlockSpec((tn, tk), lambda i, j, k: (j, k)),
    ]

    has_bias = b is not None
    if has_bias:
        bp = (b if Np == N else jnp.pad(b, (0, Np - N))).reshape(1, Np)
        inputs.append(bp)
        in_specs.append(pl.BlockSpec((1, tn), lambda i, j, k: (0, j)))

    has_residual = residual is not None
    if has_residual:
        rp = (residual if (Tp, Np) == (T, N)
              else jnp.pad(residual, ((0, Tp - T), (0, Np - N))))
        inputs.append(rp)
        in_specs.append(pl.BlockSpec((tm, tn), lambda i, j, k: (i, j)))

    out = pl.pallas_call(
        functools.partial(_linear_kernel, activation=activation,
                          has_bias=has_bias, has_residual=has_residual),
        out_shape=jax.ShapeDtypeStruct((Tp, Np), out_dtype),
        grid_spec=pltpu.PrefetchScalarGridSpec(
            num_scalar_prefetch=0,
            grid=(Tp // tm, Np // tn, Kp // tk),
            in_specs=in_specs,
            out_specs=pl.BlockSpec((tm, tn), lambda i, j, k: (i, j)),
            scratch_shapes=[pltpu.VMEM((tm, tn), jnp.float32)],
        ),
        compiler_params=pltpu.CompilerParams(
            dimension_semantics=("parallel", "parallel", "arbitrary")),
    )(*inputs)
    if (Tp, Np) != (T, N):
        out = out[:T, :N]
    return out


# --------------------------------- layernorm --------------------------------


def _layernorm_kernel(x_ref, g_ref, b_ref, o_ref, *, eps):
    x = x_ref[...].astype(jnp.float32)
    mean = jnp.mean(x, axis=-1, keepdims=True)
    var = jnp.mean(jnp.square(x - mean), axis=-1, keepdims=True)
    y = (x - mean) * jax.lax.rsqrt(var + eps)
    y = y * g_ref[...].astype(jnp.float32) + b_ref[...].astype(jnp.float32)
    o_ref[...] = y.astype(o_ref.dtype)


def layernorm(x, gamma, beta, eps, *, tm=256):
    T, H = x.shape
    tm = min(tm, _round_up(T, 8))
    Tp = _round_up(T, tm)
    xp = x if Tp == T else jnp.pad(x, ((0, Tp - T), (0, 0)))
    out = pl.pallas_call(
        functools.partial(_layernorm_kernel, eps=eps),
        out_shape=jax.ShapeDtypeStruct((Tp, H), x.dtype),
        grid_spec=pltpu.PrefetchScalarGridSpec(
            num_scalar_prefetch=0,
            grid=(Tp // tm,),
            in_specs=[pl.BlockSpec((tm, H), lambda i: (i, 0)),
                      pl.BlockSpec((1, H), lambda i: (0, 0)),
                      pl.BlockSpec((1, H), lambda i: (0, 0))],
            out_specs=pl.BlockSpec((tm, H), lambda i: (i, 0)),
        ),
        compiler_params=pltpu.CompilerParams(
            dimension_semantics=("parallel",)),
    )(xp, gamma.reshape(1, H), beta.reshape(1, H))
    return out[:T] if Tp != T else out


# ----------------------------- causal flash attention -----------------------


def _flash_attn_kernel(q_ref, k_ref, v_ref, o_ref, m_ref, l_ref, acc_ref, *,
                       scale, tq, tk, kv_padded):
    qi = pl.program_id(1)
    ki = pl.program_id(2)
    nkb = pl.num_programs(2)

    @pl.when(ki == 0)
    def _():
        m_ref[...] = jnp.full_like(m_ref, -jnp.inf)
        l_ref[...] = jnp.zeros_like(l_ref)
        acc_ref[...] = jnp.zeros_like(acc_ref)

    q_start = qi * tq
    k_start = ki * tk
    needed = k_start <= q_start + (tq - 1)        # block not fully above diag
    crosses = (k_start + (tk - 1)) > q_start      # block needs the causal mask
    if kv_padded:
        crosses = jnp.logical_or(crosses, ki == nkb - 1)  # mask padded keys

    def step(apply_mask):
        # QK^T on the MXU in bf16, f32 accumulate; scale applied in f32.
        s = jax.lax.dot_general(
            q_ref[...], k_ref[...], (((1,), (1,)), ((), ())),
            preferred_element_type=jnp.float32) * scale
        if apply_mask:
            row = q_start + jax.lax.broadcasted_iota(jnp.int32, (tq, tk), 0)
            col = k_start + jax.lax.broadcasted_iota(jnp.int32, (tq, tk), 1)
            s = jnp.where(col <= row, s, jnp.float32(-1e30))
        m_prev = m_ref[...]
        m_new = jnp.maximum(m_prev, jnp.max(s, axis=-1, keepdims=True))
        alpha = jnp.exp(m_prev - m_new)
        p = jnp.exp(s - m_new)
        l_ref[...] = alpha * l_ref[...] + jnp.sum(p, axis=-1, keepdims=True)
        acc_ref[...] = alpha * acc_ref[...] + jnp.dot(
            p.astype(v_ref.dtype), v_ref[...],
            preferred_element_type=jnp.float32)
        m_ref[...] = m_new

    @pl.when(jnp.logical_and(needed, crosses))
    def _():
        step(apply_mask=True)       # diagonal / padded blocks: masked

    @pl.when(jnp.logical_and(needed, jnp.logical_not(crosses)))
    def _():
        step(apply_mask=False)      # fully-below-diagonal blocks: no mask work

    @pl.when(ki == nkb - 1)
    def _():
        o_ref[...] = (acc_ref[...] * pl.reciprocal(l_ref[...], approx=True)
                      ).astype(o_ref.dtype)


def flash_attention(q, k, v, scale, *, blk=128):
    """Causal flash attention.  q, k, v: [H, T, D] -> [H, T, D]."""
    H, T, D = q.shape
    t_blk = min(blk, _round_up(T, 8))
    Tp = _round_up(T, t_blk)
    Dp = _round_up(D, 128)          # pad head_dim to 128 lanes for the MXU

    def pad(x):
        if (Tp, Dp) == (T, D):
            return x
        return jnp.pad(x, ((0, 0), (0, Tp - T), (0, Dp - D)))

    qp, kp, vp = pad(q), pad(k), pad(v)
    nblk = Tp // t_blk

    # KV blocks fully above the diagonal (j > i, with tq == tk) contribute
    # nothing: compute is skipped in-kernel, and clamping the block index back
    # to i keeps it equal to the previous iteration's index so Pallas never
    # issues the (wasted) DMA for those tiles.
    def kv_map(h, i, j):
        return (h, jnp.minimum(j, i), 0)

    out = pl.pallas_call(
        functools.partial(_flash_attn_kernel, scale=scale, tq=t_blk, tk=t_blk,
                          kv_padded=(Tp != T)),
        out_shape=jax.ShapeDtypeStruct((H, Tp, Dp), q.dtype),
        grid_spec=pltpu.PrefetchScalarGridSpec(
            num_scalar_prefetch=0,
            grid=(H, nblk, nblk),
            in_specs=[
                pl.BlockSpec((None, t_blk, Dp), lambda h, i, j: (h, i, 0)),
                pl.BlockSpec((None, t_blk, Dp), kv_map),
                pl.BlockSpec((None, t_blk, Dp), kv_map),
            ],
            out_specs=pl.BlockSpec((None, t_blk, Dp), lambda h, i, j: (h, i, 0)),
            scratch_shapes=[
                pltpu.VMEM((t_blk, 1), jnp.float32),    # running max
                pltpu.VMEM((t_blk, 1), jnp.float32),    # running denom
                pltpu.VMEM((t_blk, Dp), jnp.float32),   # output accumulator
            ],
        ),
        compiler_params=pltpu.CompilerParams(
            dimension_semantics=("parallel", "parallel", "arbitrary")),
    )(qp, kp, vp)
    return out[:, :T, :D]


# ----------------------- in-place KV-cache scatter kernel -------------------


def _kv_cache_kernel(slots_ref, k_ref, v_ref, kc_hbm, vc_hbm, ko_ref, vo_ref):
    del slots_ref, kc_hbm, vc_hbm   # caches are aliased in place; only write new
    ko_ref[...] = k_ref[...]
    vo_ref[...] = v_ref[...]


def update_kv_cache(k_new, v_new, k_cache, v_cache, slots):
    """paged_attention.reshape_and_cache: scatter new k/v rows into the cache
    in place (caches aliased via input_output_aliases; slot indices are scalar
    prefetched and drive the output index_map)."""
    T, nkv, hd = k_new.shape
    return pl.pallas_call(
        _kv_cache_kernel,
        out_shape=(jax.ShapeDtypeStruct(k_cache.shape, k_cache.dtype),
                   jax.ShapeDtypeStruct(v_cache.shape, v_cache.dtype)),
        grid_spec=pltpu.PrefetchScalarGridSpec(
            num_scalar_prefetch=1,
            grid=(T,),
            in_specs=[
                pl.BlockSpec((None, nkv, hd), lambda t, s: (t, 0, 0)),
                pl.BlockSpec((None, nkv, hd), lambda t, s: (t, 0, 0)),
                pl.BlockSpec(memory_space=pl.ANY),
                pl.BlockSpec(memory_space=pl.ANY),
            ],
            out_specs=(
                pl.BlockSpec((None, nkv, hd), lambda t, s: (s[t], 0, 0)),
                pl.BlockSpec((None, nkv, hd), lambda t, s: (s[t], 0, 0)),
            ),
        ),
        input_output_aliases={3: 0, 4: 1},
        compiler_params=pltpu.CompilerParams(
            dimension_semantics=("arbitrary",)),
    )(slots, k_new, v_new, k_cache, v_cache)


# ------------------------------- plain-JAX glue ------------------------------


def get_cos_sin(position_ids, rotary_dim, base=10000.0):
    inv_freq = 1.0 / (
        base ** (jnp.arange(0, rotary_dim, 2, dtype=jnp.float32) / rotary_dim)
    )
    freqs = position_ids.astype(jnp.float32)[:, None] * inv_freq[None, :]
    return jnp.cos(freqs), jnp.sin(freqs)  # each [T, rotary_dim // 2]


def apply_partial_rotary(x, cos, sin, rotary_dim):
    # x: [T, H, D]; rotate the first `rotary_dim` dims (neox / half-split).
    x_rot = x[..., :rotary_dim].astype(jnp.float32)
    x_pass = x[..., rotary_dim:].astype(jnp.float32)
    half = rotary_dim // 2
    x1 = x_rot[..., :half]
    x2 = x_rot[..., half:]
    c = cos[:, None, :]
    s = sin[:, None, :]
    o1 = x1 * c - x2 * s
    o2 = x2 * c + x1 * s
    return jnp.concatenate([o1, o2, x_pass], axis=-1)


# ----------------------------------- model -----------------------------------


CFG = dict(
    vocab_size=128,
    hidden_size=64,
    num_attention_heads=4,
    num_key_value_heads=4,   # Phi default: n_head_kv == num_heads
    num_hidden_layers=2,
    intermediate_size=128,
    partial_rotary_factor=0.5,
    layer_norm_eps=1e-5,
    hidden_act="gelu_pytorch_tanh",  # -> tanh-approx gelu
)


def init_params(key, cfg):
    h = cfg["hidden_size"]
    nh = cfg["num_attention_heads"]
    nkv = cfg["num_key_value_heads"]
    hd = h // nh
    inter = cfg["intermediate_size"]
    vocab = cfg["vocab_size"]

    def w(k, shape):  # bf16 matmul weights, f32 norm/bias params
        return (0.02 * jax.random.normal(k, shape, dtype=jnp.float32)
                ).astype(jnp.bfloat16)

    keys = jax.random.split(key, 2 + 4 * cfg["num_hidden_layers"])
    ki = iter(range(len(keys)))
    params = {
        "embed": w(keys[next(ki)], (vocab, h)),
        "final_ln_w": jnp.ones((h,), jnp.float32),
        "final_ln_b": jnp.zeros((h,), jnp.float32),
        "lm_head_w": w(keys[next(ki)], (vocab, h)),
        "layers": [],
    }
    qkv_out = (nh + 2 * nkv) * hd
    for _ in range(cfg["num_hidden_layers"]):
        params["layers"].append({
            "ln_w": jnp.ones((h,), jnp.float32),
            "ln_b": jnp.zeros((h,), jnp.float32),
            "qkv_w": w(keys[next(ki)], (qkv_out, h)),
            "qkv_b": 0.01 * jnp.ones((qkv_out,), jnp.float32),
            "dense_w": w(keys[next(ki)], (h, h)),
            "dense_b": 0.01 * jnp.ones((h,), jnp.float32),
            "fc1_w": w(keys[next(ki)], (inter, h)),
            "fc1_b": 0.01 * jnp.ones((inter,), jnp.float32),
            "fc2_w": w(keys[next(ki)], (h, inter)),
            "fc2_b": 0.01 * jnp.ones((h,), jnp.float32),
        })
    return params


def flash_phi_forward(params, input_ids, position_ids, slots, kv_cache, cfg,
                      lm_head_indices=None):
    h = cfg["hidden_size"]
    nh = cfg["num_attention_heads"]
    nkv = cfg["num_key_value_heads"]
    hd = h // nh
    rotary_dim = int(cfg["partial_rotary_factor"] * hd)
    eps = cfg["layer_norm_eps"]
    softmax_scale = hd ** (-0.5)
    T = input_ids.shape[0]
    dtype = params["embed"].dtype

    hidden = params["embed"][input_ids]                     # [T, H] bf16
    cos, sin = get_cos_sin(position_ids, rotary_dim)

    new_kv_cache = []
    for i, lp in enumerate(params["layers"]):
        normed = layernorm(hidden, lp["ln_w"], lp["ln_b"], eps)

        # --- attention ---
        qkv = linear(normed, lp["qkv_w"], lp["qkv_b"])      # [T, (nh+2*nkv)*hd]
        q = qkv[:, : nh * hd].reshape(T, nh, hd)
        kv = qkv[:, nh * hd:].reshape(T, 2, nkv, hd)
        k = kv[:, 0]
        v = kv[:, 1]
        q = apply_partial_rotary(q, cos, sin, rotary_dim).astype(dtype)
        k = apply_partial_rotary(k, cos, sin, rotary_dim).astype(dtype)

        # paged_attention.reshape_and_cache: in-place scatter into the cache
        kc, vc = update_kv_cache(k, v, kv_cache[i][0], kv_cache[i][1], slots)
        new_kv_cache.append((kc, vc))

        # prefill path (cu_seqlen_prefill is not None): causal flash attention
        # TODO(synk): decode path (paged_attention over block_tables) not implemented
        attn = flash_attention(
            jnp.transpose(q, (1, 0, 2)),
            jnp.transpose(k, (1, 0, 2)),
            jnp.transpose(v, (1, 0, 2)),
            softmax_scale,
        )                                                   # [nh, T, hd]
        attn = jnp.transpose(attn, (1, 0, 2)).reshape(T, nh * hd)

        # dense(attn) + hidden   (residual fused into the matmul epilogue)
        attn_res = linear(attn, lp["dense_w"], lp["dense_b"], residual=hidden)

        # --- MLP on the same normed states (Phi parallel block) ---
        mlp = linear(normed, lp["fc1_w"], lp["fc1_b"], activation="gelu_tanh")
        # fc2(mlp) + dense(attn) + hidden  -> new hidden (residual fused)
        hidden = linear(mlp, lp["fc2_w"], lp["fc2_b"], residual=attn_res)

    hidden = layernorm(hidden, params["final_ln_w"], params["final_ln_b"], eps)
    if lm_head_indices is not None:
        hidden = hidden[lm_head_indices]
    logits = linear(hidden, params["lm_head_w"], out_dtype=jnp.float32)
    speculative_logits = None
    return logits, speculative_logits, new_kv_cache


# ------------------------------------ main ------------------------------------


if __name__ == "__main__":
    cfg = CFG
    key = jax.random.PRNGKey(0)
    pkey, ikey = jax.random.split(key)
    params = init_params(pkey, cfg)

    T = 8
    num_slots = 16
    nh = cfg["num_attention_heads"]
    nkv = cfg["num_key_value_heads"]
    hd = cfg["hidden_size"] // nh

    input_ids = jax.random.randint(ikey, (T,), 0, cfg["vocab_size"], dtype=jnp.int32)
    position_ids = jnp.arange(T, dtype=jnp.int32)
    slots = jnp.arange(T, dtype=jnp.int32)
    kv_cache = [
        (
            jnp.zeros((num_slots, nkv, hd), jnp.bfloat16),
            jnp.zeros((num_slots, nkv, hd), jnp.bfloat16),
        )
        for _ in range(cfg["num_hidden_layers"])
    ]

    logits, spec_logits, new_cache = flash_phi_forward(
        params, input_ids, position_ids, slots, kv_cache, cfg
    )
    logits = jax.block_until_ready(logits)
    assert logits.shape == (T, cfg["vocab_size"])
    assert spec_logits is None
    assert bool(jnp.all(jnp.isfinite(logits)))
    print("KERNEL_OK")
</pallas_src>

<mosaic_0001>
module attributes {stable_mosaic.version = 11 : i64} {
  func.func @_layernorm_kernel(%arg0: i32, %arg1: memref<8x64xbf16, #tpu.memory_space<vmem>>, %arg2: memref<1x64xf32, #tpu.memory_space<vmem>>, %arg3: memref<1x64xf32, #tpu.memory_space<vmem>>, %arg4: memref<8x64xbf16, #tpu.memory_space<vmem>>) attributes {dimension_semantics = [#tpu.dimension_semantics<parallel>], iteration_bounds = array<i64: 1>, scalar_prefetch = 0 : i64, scratch_operands = 0 : i64, tpu.core_type = #tpu.core_type<tc>, window_params = [{transform_indices = @transform_0, window_bounds = array<i64: 8, 64>}, {pipeline_mode = #tpu.pipeline_mode<synchronous>, transform_indices = @transform_1, window_bounds = array<i64: 1, 64>}, {pipeline_mode = #tpu.pipeline_mode<synchronous>, transform_indices = @transform_2, window_bounds = array<i64: 1, 64>}, {transform_indices = @transform_3, window_bounds = array<i64: 8, 64>}]} {
    %c0 = arith.constant 0 : index
    %c0_0 = arith.constant 0 : index
    %0 = vector.load %arg1[%c0, %c0_0] : memref<8x64xbf16, #tpu.memory_space<vmem>>, vector<8x64xbf16>
    %1 = arith.extf %0 : vector<8x64xbf16> to vector<8x64xf32>
    %cst = arith.constant dense<0.000000e+00> : vector<8xf32>
    %2 = vector.multi_reduction <add>, %1, %cst [1] : vector<8x64xf32> to vector<8xf32>
    %3 = vector.shape_cast %2 : vector<8xf32> to vector<8x1xf32>
    %cst_1 = arith.constant 6.400000e+01 : f32
    %4 = vector.broadcast %cst_1 : f32 to vector<8x1xf32>
    %5 = arith.divf %3, %4 : vector<8x1xf32>
    %6 = vector.broadcast %5 : vector<8x1xf32> to vector<8x64xf32>
    %7 = arith.subf %1, %6 : vector<8x64xf32>
    %8 = arith.mulf %7, %7 : vector<8x64xf32>
    %cst_2 = arith.constant dense<0.000000e+00> : vector<8xf32>
    %9 = vector.multi_reduction <add>, %8, %cst_2 [1] : vector<8x64xf32> to vector<8xf32>
    %10 = vector.shape_cast %9 : vector<8xf32> to vector<8x1xf32>
    %cst_3 = arith.constant 6.400000e+01 : f32
    %11 = vector.broadcast %cst_3 : f32 to vector<8x1xf32>
    %12 = arith.divf %10, %11 : vector<8x1xf32>
    %13 = vector.broadcast %5 : vector<8x1xf32> to vector<8x64xf32>
    %14 = arith.subf %1, %13 : vector<8x64xf32>
    %cst_4 = arith.constant 9.99999974E-6 : f32
    %15 = vector.broadcast %cst_4 : f32 to vector<8x1xf32>
    %16 = arith.addf %12, %15 : vector<8x1xf32>
    %17 = math.rsqrt %16 : vector<8x1xf32>
    %18 = vector.broadcast %17 : vector<8x1xf32> to vector<8x64xf32>
    %19 = arith.mulf %14, %18 : vector<8x64xf32>
    %c0_5 = arith.constant 0 : index
    %c0_6 = arith.constant 0 : index
    %20 = vector.load %arg2[%c0_5, %c0_6] : memref<1x64xf32, #tpu.memory_space<vmem>>, vector<1x64xf32>
    %21 = vector.broadcast %20 : vector<1x64xf32> to vector<8x64xf32>
    %22 = arith.mulf %19, %21 : vector<8x64xf32>
    %c0_7 = arith.constant 0 : index
    %c0_8 = arith.constant 0 : index
    %23 = vector.load %arg3[%c0_7, %c0_8] : memref<1x64xf32, #tpu.memory_space<vmem>>, vector<1x64xf32>
    %24 = vector.broadcast %23 : vector<1x64xf32> to vector<8x64xf32>
    %25 = arith.addf %22, %24 : vector<8x64xf32>
    %26 = arith.truncf %25 : vector<8x64xf32> to vector<8x64xbf16>
    %c0_9 = arith.constant 0 : index
    %c0_10 = arith.constant 0 : index
    %27 = vector.load %arg4[%c0_9, %c0_10] : memref<8x64xbf16, #tpu.memory_space<vmem>>, vector<8x64xbf16>
    tpu.vector_store %arg4[%c0_9, %c0_10], %26 {strides = array<i32>} : memref<8x64xbf16, #tpu.memory_space<vmem>>, vector<8x64xbf16>,
    return
  }
  func.func @transform_0(%arg0: i32) -> (i32, i32) {
    %c0_i32 = arith.constant 0 : i32
    %c0_i32_0 = arith.constant 0 : i32
    return %arg0, %c0_i32 : i32, i32
  }
  func.func @transform_1(%arg0: i32) -> (i32, i32) {
    %c0_i32 = arith.constant 0 : i32
    %c0_i32_0 = arith.constant 0 : i32
    %c0_i32_1 = arith.constant 0 : i32
    return %c0_i32, %c0_i32_0 : i32, i32
  }
  func.func @transform_2(%arg0: i32) -> (i32, i32) {
    %c0_i32 = arith.constant 0 : i32
    %c0_i32_0 = arith.constant 0 : i32
    %c0_i32_1 = arith.constant 0 : i32
    return %c0_i32, %c0_i32_0 : i32, i32
  }
  func.func @transform_3(%arg0: i32) -> (i32, i32) {
    %c0_i32 = arith.constant 0 : i32
    %c0_i32_0 = arith.constant 0 : i32
    return %arg0, %c0_i32 : i32, i32
  }
}

</mosaic_0001>

<bundles_post_ra>
// kernel: tpu_custom_call.1
= control target key start
LH: loop header
LB: loop body
LE: loop exit
PB: predicated region body
PF: predicated region fallthrough
CT: control target
= control target key end

     0   :  { %8 = vsyncpa [#allocation3], 0  ;;  %s162_s0 = inlined_call_operand.hbm [shape: bf16[8,64], index: 0, kind: input, shape index: {}]   ;;  %s163_s1 = inlined_call_operand.vmem [shape: f32[1,64], index: 1, kind: input, shape index: {}]   ;;  %s164_s2 = inlined_call_operand.vmem [shape: f32[1,64], index: 2, kind: input, shape index: {}]   ;;  %s165_s3 = inlined_call_operand.hbm [shape: bf16[8,64], index: 3, kind: output, shape index: {}]  }
   0x1   :  { %9 = vsyncpa [#allocation4], 0  ;;  %s128_s12 = smov [#allocation2]  }
   0x2   :  { %s16_s13 = sshll.u32 %s128_s12, 4  ;;  %s17_s13 = int_to_ptr.vmem [resolvable:$true] %s16_s13 }
   0x3   :  { %s92_s14 = scalar_lea.vmem %s17_s13, 64  ;;  %p97_p1 = scmp.lt.s32.totalorder %s17_s13, %s17_s13 }
   0x4   :  { %p93_p0 = scmp.ne.s32.totalorder %s17_s13, %s92_s14  ;;  %p98_p2 = scmp.lt.s32.totalorder %s92_s14, %s92_s14 }
   0x6   :  { %p99_p3 = por %p98_p2, %p97_p1 }
   0x8   :  { %p100_p4 = pnand %p99_p3, %p93_p0 }
   0xa   :  { %103 = shalt.err (!%p100_p4)
}
   0xb   :  { %19 = dma.hbm_to_vmem [thread:$0]  %s162_s0, 64, %s17_s13, [#allocation3]  }
   0xc   :  { %124 = dma.done.wait [#allocation3], 64  }
   0xd   :  { %125 = vsyncadd [#allocation3], 4294967232  ;;  %v27_v0 = vld [vmem:[#allocation2] sm:$0xf]  ;;  %vm29_vm0 = vcmask 523264   ;;  %s129_s20 = smov [#allocation5]  }
   0xe   :  { %v28_v1 = vunpack.c.l.bf16 %v27_v0  ;;  %v78_v12 = vld [vmem:[%s163_s1] ss:$0 sm:$0xff]  ;;  %s69_s21 = sshll.u32 %s129_s20, 4  ;;  %vm61_vm1 = vcmask 519168   ;;  %s70_s21 = int_to_ptr.vmem [resolvable:$true] %s69_s21 }
   0xf   :  { %v79_v14 = vld [vmem:[%s164_s2] ss:$0 sm:$0xff]  ;;  %s104_s22 = scalar_lea.vmem %s70_s21, 64  ;;  %p109_p6 = scmp.lt.s32.totalorder %s70_s21, %s70_s21 }
  0x10   :  { %v30_v2 = vsel %vm29_vm0, %v28_v1, 0.0  ;;  %p105_p5 = scmp.ne.s32.totalorder %s70_s21, %s104_s22  ;;  %p110_p7 = scmp.lt.s32.totalorder %s104_s22, %s104_s22 }
  0x11   :  { %31 = vadd.xlane.f32.xlu0 %v30_v2 }
  0x12   :  { %p111_p8 = por %p110_p7, %p109_p6 }
  0x14   :  { %p112_p9 = pnand %p111_p8, %p105_p5 }
  0x9a   :  { %v32_v3 = vpop.xlane.xlu0 %31 }
  0x9b   :  { %v34_v4 = vmul.f32 0.015625, %v32_v3 }
  0x9d   :  { %v35_v5 = vsub.f32 %v28_v1, %v34_v4 }
  0x9f   :  { %v36_v6 = vmul.f32 %v35_v5, %v35_v5 }
  0xa1   :  { %v37_v7 = vsel %vm29_vm0, %v36_v6, 0.0 }
  0xa2   :  { %38 = vadd.xlane.f32.xlu0 %v37_v7 }
 0x12b   :  { %v39_v8 = vpop.xlane.xlu0 %38 }
 0x12c   :  { %v40_v9 = vmul.f32 0.015625, %v39_v8 }
 0x12e   :  { %v41_v10 = vadd.f32 1e-05, %v40_v9 }
 0x130   :  { %82 = vrsqrt.f32 %v41_v10 }
 0x13d   :  { %v83_v11 = vpop.eup %82 }
 0x13e   :  { %v43_v13 = vmul.f32 %v83_v11, %v35_v5 }
 0x140   :  { %v51_v15 = vmul.f32 %v78_v12, %v43_v13 }
 0x142   :  { %v59_v16 = vadd.f32 %v79_v14, %v51_v15 }
 0x144   :  { %v60_v17 = vpack.c.bf16 %v59_v16, %v59_v16 }
 0x146   :  { %62 = vst.msk [vmem:[#allocation5] sm:$0xf] %vm61_vm1, %v60_v17 }
 0x147   :  { %115 = shalt.err (!%p112_p9)
}
 0x148   :  { %72 = dma.vmem_to_hbm [thread:$0]  %s70_s21, 64, %s165_s3, [#allocation4]  }
 0x149   :  { %126 = dma.done.wait [#allocation4], 64  }
 0x14a   :  { %127 = vsyncadd [#allocation4], 4294967232 }
 0x14b   :  { %76 = vsyncpa [#allocation3], 1 }
 0x14c   :  { %77 = vsyncpa [#allocation4], 1 }

</bundles_post_ra>
